<compile_context>
chip_gen: v6e
topology: v6e:2x2x1
jax: 0.10.0
libtpu: 0.0.40
codegen_flags: <defaults>
</compile_context>

<pallas_src>
import math
import functools

import jax
import jax.numpy as jnp
from jax.experimental import pallas as pl
from jax.experimental.pallas import tpu as pltpu


def _pool_gate_kernel(w_ref, x_ref, gate_ref, acc_ref, *,
                      k: int, channels: int, hw_total: int, hw_tile: int):
    """Pass 1: global average pool over HW + Conv1d(1,1,k) over channels + sigmoid.

    w_ref    : (k,) f32 in SMEM                       -- conv weights
    x_ref    : (1, C, hw_tile) block in VMEM          -- input tile (channels on sublanes)
    gate_ref : (1, C, 1) block in VMEM                -- per-channel gate (written at last HW tile)
    acc_ref  : (C + 2*pad, 1) f32 VMEM scratch        -- zero-padded running channel sums
    """
    pad = k // 2
    t = pl.program_id(1)
    n_t = pl.num_programs(1)

    @pl.when(t == 0)
    def _init():
        acc_ref[...] = jnp.zeros_like(acc_ref)

    xv = x_ref[0]                                           # (C, hw_tile), input dtype
    if hw_total % hw_tile != 0:
        # Mask the out-of-range lanes of the (padded) last tile before reducing.
        lane = jax.lax.broadcasted_iota(jnp.int32, (channels, hw_tile), 1)
        valid = (t * hw_tile + lane) < hw_total
        xv = jnp.where(valid, xv, jnp.zeros((), xv.dtype))

    partial = jnp.sum(xv.astype(jnp.float32), axis=1, keepdims=True)   # (C, 1) f32
    acc_ref[pl.ds(pad, channels), :] += partial             # accumulate into padded center

    @pl.when(t == n_t - 1)
    def _finalize():
        # Zero-padded "same" cross-correlation along channels as k shifted slices:
        #   conv[c] = sum_i w[i] * sum[c + i - pad]
        conv = jnp.zeros((channels, 1), jnp.float32)
        for i in range(k):                                  # k is tiny & static
            conv = conv + w_ref[i] * acc_ref[pl.ds(i, channels), :]
        mean_conv = conv * jnp.float32(1.0 / hw_total)      # conv is linear -> scale once
        gate_ref[0] = jax.nn.sigmoid(mean_conv).astype(gate_ref.dtype)


def _scale_kernel(x_ref, g_ref, o_ref):
    """Pass 2: out = x * gate, broadcast over the HW (lane) axis, in the input dtype."""
    o_ref[0] = x_ref[0] * g_ref[0]                          # (C, hw_tile) * (C, 1)


def _pick_hw_tile(hw: int, channels: int, itemsize: int,
                  target_bytes: int = 1 << 20, max_cols=None) -> int:
    """Largest HW tile (multiple of 128 lanes, or the full HW) under a VMEM byte budget."""
    cols = (target_bytes // max(1, channels * itemsize)) // 128 * 128
    cols = max(128, cols)
    if max_cols is not None:
        cols = max(128, min(cols, (max_cols // 128) * 128))
    return hw if hw <= cols else cols


def eca_forward(x_nchw: jax.Array, w: jax.Array, *, max_tile_cols=None) -> jax.Array:
    """EfficientBlock.forward.  x_nchw: (B, C, H, W), w: (k,) Conv1d(1,1,k) weights."""
    B, C, H, W = x_nchw.shape
    k = int(w.shape[0])
    pad = k // 2
    HW = H * W
    itemsize = jnp.dtype(x_nchw.dtype).itemsize

    x_flat = x_nchw.reshape(B, C, HW)                       # free: no data movement
    hw_tile = _pick_hw_tile(HW, C, itemsize, max_cols=max_tile_cols)
    n_hw = pl.cdiv(HW, hw_tile)

    pool_kernel = functools.partial(
        _pool_gate_kernel, k=k, channels=C, hw_total=HW, hw_tile=hw_tile)

    # Pass 1: per-(batch, channel) gate. Reads x once, writes B*C values.
    gate = pl.pallas_call(
        pool_kernel,
        out_shape=jax.ShapeDtypeStruct((B, C, 1), x_nchw.dtype),
        grid=(B, n_hw),
        in_specs=[
            pl.BlockSpec(memory_space=pltpu.MemorySpace.SMEM),        # conv weights
            pl.BlockSpec((1, C, hw_tile), lambda b, t: (b, 0, t)),    # x tile
        ],
        out_specs=pl.BlockSpec((1, C, 1), lambda b, t: (b, 0, 0)),    # resident across HW tiles
        scratch_shapes=[pltpu.VMEM((C + 2 * pad, 1), jnp.float32)],
        compiler_params=pltpu.CompilerParams(
            dimension_semantics=("parallel", "arbitrary")),
        cost_estimate=pl.CostEstimate(
            flops=B * C * (HW + 2 * k),
            transcendentals=B * C,
            bytes_accessed=B * C * HW * itemsize + B * C * itemsize + k * 4),
    )(w.astype(jnp.float32), x_flat)

    # Pass 2: out = x * gate (purely HBM-bound elementwise pass).
    # (Could use input_output_aliases to write in place if the caller no longer needs x.)
    out = pl.pallas_call(
        _scale_kernel,
        out_shape=jax.ShapeDtypeStruct((B, C, HW), x_nchw.dtype),
        grid=(B, n_hw),
        in_specs=[
            pl.BlockSpec((1, C, hw_tile), lambda b, t: (b, 0, t)),    # x tile
            pl.BlockSpec((1, C, 1), lambda b, t: (b, 0, 0)),          # gate (fetched once per b)
        ],
        out_specs=pl.BlockSpec((1, C, hw_tile), lambda b, t: (b, 0, t)),
        compiler_params=pltpu.CompilerParams(
            dimension_semantics=("parallel", "parallel")),
        cost_estimate=pl.CostEstimate(
            flops=B * C * HW,
            transcendentals=0,
            bytes_accessed=2 * B * C * HW * itemsize + B * C * itemsize),
    )(x_flat, gate)

    return out.reshape(B, C, H, W)


if __name__ == "__main__":
    # Shapes consistent with the module: NCHW input, channels drive the kernel size.
    B, C, H, W = 2, 16, 16, 16
    gamma, b = 2, 1
    t = int(abs((math.log2(C) + b) / gamma))
    k = t if t % 2 else t + 1            # C=16 -> t=2 -> k=3, padding=1

    key = jax.random.PRNGKey(0)
    kx, kw = jax.random.split(key)
    x = jax.random.normal(kx, (B, C, H, W), dtype=jnp.float32)

    # Conv1d(1, 1, k, bias=False) weight, flattened to (k,); deterministic init.
    bound = 1.0 / math.sqrt(k)
    w = jax.random.uniform(kw, (k,), jnp.float32, minval=-bound, maxval=bound)

    # Plain-JAX reference: zero-padded "same" cross-correlation, like PyTorch Conv1d.
    y_ref = jnp.mean(x, axis=(2, 3))                                  # (B, C)
    y_pad = jnp.pad(y_ref, ((0, 0), (k // 2, k // 2)))
    conv_ref = sum(w[i] * y_pad[:, i:i + C] for i in range(k))
    ref = x * jax.nn.sigmoid(conv_ref)[:, :, None, None]

    # 1) Default tiling (here HW=256 fits in a single lane-dense tile per batch).
    out = jax.block_until_ready(eca_forward(x, w))
    assert jnp.allclose(out, ref, atol=1e-5, rtol=1e-5), "mismatch vs reference (default tiling)"

    # 2) Force HW tiling (2 tiles of 128 lanes) to exercise the multi-tile pooling
    #    accumulator and the parallel-HW multiply pass used for large images.
    out_tiled = jax.block_until_ready(eca_forward(x, w, max_tile_cols=128))
    assert jnp.allclose(out_tiled, ref, atol=1e-5, rtol=1e-5), "mismatch vs reference (HW-tiled)"

    print("KERNEL_OK")
</pallas_src>

<mosaic_0001>
module attributes {stable_mosaic.version = 11 : i64} {
  func.func @_pool_gate_kernel(%arg0: i32, %arg1: i32, %arg2: memref<3xf32, #tpu.memory_space<smem>>, %arg3: memref<1x16x256xf32, #tpu.memory_space<vmem>>, %arg4: memref<1x16x1xf32, #tpu.memory_space<vmem>>, %arg5: memref<18x1xf32, #tpu.memory_space<vmem>>) attributes {dimension_semantics = [#tpu.dimension_semantics<parallel>, #tpu.dimension_semantics<arbitrary>], iteration_bounds = array<i64: 2, 1>, scalar_prefetch = 0 : i64, scratch_operands = 1 : i64, tpu.core_type = #tpu.core_type<tc>, window_params = [{transform_indices = @transform_0, window_bounds = array<i64: 3>}, {transform_indices = @transform_1, window_bounds = array<i64: 1, 16, 256>}, {transform_indices = @transform_2, window_bounds = array<i64: 1, 16, 1>}]} {
    %c0_i32 = arith.constant 0 : i32
    %0 = arith.cmpi eq, %arg1, %c0_i32 : i32
    %1 = arith.extui %0 : i1 to i32
    %c0_i32_0 = arith.constant 0 : i32
    %2 = arith.cmpi ne, %1, %c0_i32_0 : i32
    scf.if %2 {
      %cst_8 = arith.constant 0.000000e+00 : f32
      %13 = vector.broadcast %cst_8 : f32 to vector<18x1xf32>
      %c0_9 = arith.constant 0 : index
      %c0_10 = arith.constant 0 : index
      %14 = vector.load %arg5[%c0_9, %c0_10] : memref<18x1xf32, #tpu.memory_space<vmem>>, vector<18x1xf32>
      tpu.vector_store %arg5[%c0_9, %c0_10], %13 {strides = array<i32>} : memref<18x1xf32, #tpu.memory_space<vmem>>, vector<18x1xf32>,
    } else {
    }
    %c0 = arith.constant 0 : index
    %c0_1 = arith.constant 0 : index
    %c0_2 = arith.constant 0 : index
    %3 = vector.load %arg3[%c0, %c0_1, %c0_2] : memref<1x16x256xf32, #tpu.memory_space<vmem>>, vector<1x16x256xf32>
    %4 = vector.shape_cast %3 : vector<1x16x256xf32> to vector<16x256xf32>
    %cst = arith.constant dense<0.000000e+00> : vector<16xf32>
    %5 = vector.multi_reduction <add>, %4, %cst [1] : vector<16x256xf32> to vector<16xf32>
    %6 = vector.shape_cast %5 : vector<16xf32> to vector<16x1xf32>
    %c1 = arith.constant 1 : index
    %c0_3 = arith.constant 0 : index
    %7 = vector.load %arg5[%c1, %c0_3] : memref<18x1xf32, #tpu.memory_space<vmem>>, vector<16x1xf32>
    %8 = arith.addf %7, %6 : vector<16x1xf32>
    %c1_4 = arith.constant 1 : index
    %c0_5 = arith.constant 0 : index
    %9 = vector.load %arg5[%c1_4, %c0_5] : memref<18x1xf32, #tpu.memory_space<vmem>>, vector<16x1xf32>
    tpu.vector_store %arg5[%c1_4, %c0_5], %8 {strides = array<i32>} : memref<18x1xf32, #tpu.memory_space<vmem>>, vector<16x1xf32>,
    %c0_i32_6 = arith.constant 0 : i32
    %10 = arith.cmpi eq, %arg1, %c0_i32_6 : i32
    %11 = arith.extui %10 : i1 to i32
    %c0_i32_7 = arith.constant 0 : i32
    %12 = arith.cmpi ne, %11, %c0_i32_7 : i32
    scf.if %12 {
      %cst_8 = arith.constant 0.000000e+00 : f32
      %13 = vector.broadcast %cst_8 : f32 to vector<16x1xf32>
      %c0_9 = arith.constant 0 : index
      %14 = memref.load %arg2[%c0_9] : memref<3xf32, #tpu.memory_space<smem>>
      %c0_10 = arith.constant 0 : index
      %c0_11 = arith.constant 0 : index
      %15 = vector.load %arg5[%c0_10, %c0_11] : memref<18x1xf32, #tpu.memory_space<vmem>>, vector<16x1xf32>
      %16 = vector.broadcast %14 : f32 to vector<16x1xf32>
      %17 = arith.mulf %16, %15 : vector<16x1xf32>
      %18 = arith.addf %13, %17 : vector<16x1xf32>
      %c1_12 = arith.constant 1 : index
      %19 = memref.load %arg2[%c1_12] : memref<3xf32, #tpu.memory_space<smem>>
      %c1_13 = arith.constant 1 : index
      %c0_14 = arith.constant 0 : index
      %20 = vector.load %arg5[%c1_13, %c0_14] : memref<18x1xf32, #tpu.memory_space<vmem>>, vector<16x1xf32>
      %21 = vector.broadcast %19 : f32 to vector<16x1xf32>
      %22 = arith.mulf %21, %20 : vector<16x1xf32>
      %23 = arith.addf %18, %22 : vector<16x1xf32>
      %c2 = arith.constant 2 : index
      %24 = memref.load %arg2[%c2] : memref<3xf32, #tpu.memory_space<smem>>
      %c2_15 = arith.constant 2 : index
      %c0_16 = arith.constant 0 : index
      %25 = vector.load %arg5[%c2_15, %c0_16] : memref<18x1xf32, #tpu.memory_space<vmem>>, vector<16x1xf32>
      %26 = vector.broadcast %24 : f32 to vector<16x1xf32>
      %27 = arith.mulf %26, %25 : vector<16x1xf32>
      %28 = arith.addf %23, %27 : vector<16x1xf32>
      %cst_17 = arith.constant 3.906250e-03 : f32
      %29 = vector.broadcast %cst_17 : f32 to vector<16x1xf32>
      %30 = arith.mulf %28, %29 : vector<16x1xf32>
      %31 = arith.negf %30 : vector<16x1xf32>
      %32 = math.exp %31 : vector<16x1xf32>
      %cst_18 = arith.constant 1.000000e+00 : f32
      %33 = vector.broadcast %cst_18 : f32 to vector<16x1xf32>
      %34 = arith.addf %33, %32 : vector<16x1xf32>
      %35 = arith.divf %33, %34 : vector<16x1xf32>
      %c0_19 = arith.constant 0 : index
      %c0_20 = arith.constant 0 : index
      %c0_21 = arith.constant 0 : index
      %36 = vector.load %arg4[%c0_19, %c0_20, %c0_21] : memref<1x16x1xf32, #tpu.memory_space<vmem>>, vector<1x16x1xf32>
      %37 = vector.shape_cast %36 : vector<1x16x1xf32> to vector<16x1xf32>
      %38 = vector.shape_cast %35 : vector<16x1xf32> to vector<1x16x1xf32>
      tpu.vector_store %arg4[%c0_19, %c0_20, %c0_21], %38 {strides = array<i32>} : memref<1x16x1xf32, #tpu.memory_space<vmem>>, vector<1x16x1xf32>,
    } else {
    }
    return
  }
  func.func @transform_0(%arg0: i32, %arg1: i32) -> i32 {
    %c0_i32 = arith.constant 0 : i32
    %c0_i32_0 = arith.constant 0 : i32
    return %c0_i32 : i32
  }
  func.func @transform_1(%arg0: i32, %arg1: i32) -> (i32, i32, i32) {
    %c0_i32 = arith.constant 0 : i32
    %c0_i32_0 = arith.constant 0 : i32
    return %arg0, %c0_i32, %arg1 : i32, i32, i32
  }
  func.func @transform_2(%arg0: i32, %arg1: i32) -> (i32, i32, i32) {
    %c0_i32 = arith.constant 0 : i32
    %c0_i32_0 = arith.constant 0 : i32
    %c0_i32_1 = arith.constant 0 : i32
    return %arg0, %c0_i32, %c0_i32_0 : i32, i32, i32
  }
}

</mosaic_0001>

<bundles_post_ra>
// kernel: tpu_custom_call.1
= control target key start
LH: loop header
LB: loop body
LE: loop exit
PB: predicated region body
PF: predicated region fallthrough
CT: control target
= control target key end

     0   :  { %7 = vsyncpa [#allocation5], 0  ;;  %s684_s0 = inlined_call_operand.hbm [shape: f32[3], index: 0, kind: input, shape index: {}]   ;;  %s685_s1 = inlined_call_operand.hbm [shape: f32[2,16,256], index: 1, kind: input, shape index: {}]   ;;  %s686_s2 = inlined_call_operand.vmem [shape: f32[2,16,1], index: 2, kind: output, shape index: {}]  }
   0x1   :  { %8 = vsyncpa [#allocation4], 0 }
   0x2   :  { %10 = vsyncpa [#allocation4 + $0x1], 0  ;;  %s565_s9 = smov 0   ;;  %s567_s10 = smov 0  }
   0x3   :  { %s569_s11 = smov 0   ;;  %s571_s12 = smov 0  }
   0x4   :  { %s573_s13 = smov 0   ;;  %s575_s14 = smov 0  }
   0x5 LB: > { %s352_s15 = sadd.s32 4294967295, %s543_s14   ;;  %s58_s16 = sadd.s32 1, %s531_s11  ;;  %s543_s14 = sphi %s575_s14, %s16_s14   ;;  %s539_s13 = sphi %s573_s13, %s695_s13   ;;  %s535_s12 = sphi %s571_s12, %s694_s12   ;;  %s531_s11 = sphi %s569_s11, %s693_s11   ;;  %s527_s10 = sphi %s567_s10, %s692_s10   ;;  %s523_s9 = sphi %s565_s9, %s691_s9  }
   0x6   : > { %p65_p0 = scmp.ne.s32.totalorder %s531_s11, %s527_s10  ;;  %p66_p1 = scmp.eq.s32.totalorder %s543_s14, 0 }
   0x7   : > { %p71_p2 = scmp.ne.s32.totalorder %s527_s10, %s523_s9  ;;  %p599_p3 = scmp.eq.s32.totalorder %s352_s15, 0 }
   0x8   : > { %p67_p4 = por %p66_p1, %p65_p0  ;;  %p354_p5 = scmp.ge.s32.totalorder %s543_s14, 1 }
   0x9   : > { %p606_p6 = por %p599_p3, %p71_p2  ;;  %p108_p7 = scmp.lt.s32.totalorder %s543_s14, 3 }
   0xa   : > { %p388_p9 = scmp.lt.s32.totalorder %s543_s14, 2  ;;  %s28_s21 = sadd.s32 1, %s539_s13 }
   0xb   : > { %p611_p8 = pnand %p354_p5, %p108_p7  ;;  %p30_p13 = scmp.ge.s32.totalorder %s28_s21, 2 }
   0xc   : > { %p618_p11 = pnand %p388_p9, %p67_p4  ;;  %s130_s22 = sand.u32 1, %s531_s11  }
   0xd   : > { %p379_p10 = pneg %p611_p8  ;;  %s545_s23 = smov [#allocation3]  }
   0xe   : > { %s697_s21 = smov (%p30_p13, %s28_s21), 0  ;;  %s357_s26 = sshll.u32 %s130_s22, 5 }
   0xf   : > { %p380_p12 = pnand %p379_p10, %p599_p3  ;;  %s371_s27 = sshll.u32 %s539_s13, 9 }
  0x10   : > { %s53_s28 = ssub.s32 %s539_s13, %s697_s21  ;;  %s142_s3 = scalar_lea.hbm %s685_s1, %s371_s27 }
  0x11   : > { %382 = dma.hbm_to_smem (!%p380_p12), %s684_s0, 16, %s545_s23, [#allocation5]  }
  0x12   : > { %p56_p0 = scmp.eq.s32.totalorder %s53_s28, 0  ;;  %s134_s4 = scalar_lea.vmem [#allocation6], %s357_s26 }
  0x13   : > { %s143_s5 = sshll.u32 %s134_s4, 4  ;;  %s131_s7 = scalar_lea.sflag [#allocation4], %s130_s22  ;;  %s144_s5 = int_to_ptr.vmem [resolvable:$true] %s143_s5 }
  0x14   : > { %s638_s6 = scalar_select %p56_p0, %s531_s11, %s58_s16  }
  0x15   : > { %p463_p1 = pneg %p618_p11  ;;  %s474_s8 = scalar_lea.vmem %s144_s5, 512 }
  0x16   : > { %p475_p2 = scmp.ne.s32.totalorder %s144_s5, %s474_s8  ;;  %s546_s9 = smov [#allocation6]  }
  0x17   : > { %s479_s15 = sshll.u32 %s546_s9, 4  ;;  %s480_s15 = int_to_ptr.vmem [resolvable:$false] %s479_s15 }
  0x18   : > { %p477_p4 = pnand %p475_p2, %p463_p1  ;;  %s481_s23 = scalar_lea.vmem %s480_s15, 1024 }
  0x19   : > { %p482_p7 = scmp.lt.s32.totalorder %s144_s5, %s480_s15  ;;  %p483_p9 = scmp.lt.s32.totalorder %s481_s23, %s474_s8 }
  0x1a   : > { %p478_p5 = pneg %p477_p4 }
  0x1b   : > { %p484_p10 = por %p483_p9, %p482_p7 }
  0x1d   : > { %p485_p12 = pnand %p484_p10, %p478_p5 }
  0x1f   : > { %488 = shalt.err (!%p485_p12)
}
  0x20   : > { %s547_s24 = smov 256   ;;  %s548_s16 = smov 16  }
  0x21   : > { %386 = dma.hbm_to_vmem [thread:$0]  (!%p618_p11), %s142_s3, 512, %s144_s5, %s131_s7, %s547_s24, %s547_s24, %s548_s16  }
  0x22   : > { %155 = sbr.rel (%p611_p8) target bundleno = 243 (0xf3), region = 28 }
  0x27   : > { %514 = dma.done.wait (%p599_p3), [#allocation5], 16  }
  0x28   : > { %516 = vsyncadd (%p599_p3), [#allocation5], 4294967280  ;;  %s161_s22 = sand.u32 1, %s527_s10  }
  0x29   : > { %s362_s25 = sshll.u32 %s161_s22, 5  ;;  %s162_s26 = scalar_lea.sflag [#allocation4], %s161_s22 }
  0x2a   : > { %s165_s27 = scalar_lea.vmem [#allocation6], %s362_s25 }
  0x2b   : > { %518 = dma.done.wait (%p606_p6), %s162_s26, 512  }
  0x2c   : > { %520 = vsyncadd (%p606_p6), %s162_s26, 4294966784 }
  0x2d   : > { %170 = sfence }
  0x2e   : > { %v202_v0 = vld [vmem:[%s165_s27] sm:$0xff]  ;;  %v203_v1 = vld [vmem:[%s165_s27 + $0x8] sm:$0xff]  ;;  %v204_v2 = vld [vmem:[%s165_s27 + $0x10] sm:$0xff]  ;;  %vm197_vm0 = vcmask 7168   ;;  %v549_v6 = vmov 0.0   ;;  %vm200_vm1 = vcmask 1024  }
  0x2f   : > { %v206_v3 = vadd.f32 %v203_v1, %v202_v0  ;;  %v205_v4 = vld [vmem:[%s165_s27 + $0x18] sm:$0xff]  ;;  %198 = vst.msk [vmem:[#allocation2] sm:$0xff] %vm197_vm0, %v549_v6  ;;  %199 = vst.msk [vmem:[#allocation2 + $0x8] sm:$0xff] %vm197_vm0, %v549_v6  ;;  %s222_s17 = sld [smem:[#allocation3]]  ;;  %p188_p3 = scmp.lt.s32.totalorder %s535_s12, 1 }
  0x30   : > { %v209_v5 = vadd.f32 %v205_v4, %v204_v2  ;;  %201 = vst.msk [vmem:[#allocation2 + $0x10] sm:$0x3] %vm200_vm1, %v549_v6  ;;  %s365_s18 = sld [smem:[#allocation3 + $0x1]] }
  0x31   : > { %207 = vadd.xlane.f32.xlu0 %v206_v3  ;;  %s366_s19 = sld [smem:[#allocation3 + $0x2]]  ;;  %s699_s12 = smov (!%p188_p3, %s535_s12), 1 }
  0x32   : > { %s372_s20 = sshll.u32 %s699_s12, 4 }
  0x33   : > { %s192_s30 = scalar_lea.vmem %s686_s2, %s372_s20 }
  0x35   : > { %210 = vadd.xlane.f32.xlu0 %v209_v5  ;;  %v225_v13 = vstv %s222_s17 }
  0x36   : > { %v212_v7 = vld [vmem:[#allocation2 + $0x1] sm:$0xff]  ;;  %v233_v14 = vstv %s365_s18 }
  0x37   : > { %v213_v10 = vld [vmem:[#allocation2 + $0x9] sm:$0xff]  ;;  %v241_v19 = vstv %s366_s19 }
  0xba   : > { %v208_v8 = vpop.xlane.xlu0 %207 }
  0xbb   : > { %v214_v9 = vadd.f32 %v212_v7, %v208_v8 }
  0xbd   : > { %217 = vst.msk [vmem:[#allocation2 + $0x1] sm:$0xff] %vm197_vm0, %v214_v9 }
  0xbe   : > { %v211_v11 = vpop.xlane.xlu0 %210 }
  0xbf   : > { %v215_v12 = vadd.f32 %v213_v10, %v211_v11 }
  0xc1   : > { %218 = vst.msk [vmem:[#allocation2 + $0x9] sm:$0xff] %vm197_vm0, %v215_v12 }
  0xc4   : > { %v223_v15 = vld [vmem:[#allocation2] sm:$0xff] }
  0xc5   : > { %v231_v16 = vld [vmem:[#allocation2 + $0x1] sm:$0xff]  ;;  %v226_v17 = vmul.f32 %v225_v13, %v223_v15 }
  0xc6   : > { %v234_v18 = vmul.f32 %v233_v14, %v231_v16 }
  0xc8   : > { %v224_v20 = vld [vmem:[#allocation2 + $0x8] sm:$0xff]  ;;  %v236_v23 = vadd.f32 %v234_v18, %v226_v17 }
  0xc9   : > { %v232_v21 = vld [vmem:[#allocation2 + $0x9] sm:$0xff]  ;;  %v227_v24 = vmul.f32 %v225_v13, %v224_v20 }
  0xca   : > { %v239_v22 = vld [vmem:[#allocation2 + $0x2] sm:$0xff]  ;;  %v235_v25 = vmul.f32 %v233_v14, %v232_v21  ;;  %v240_v26 = vld [vmem:[#allocation2 + $0xa] sm:$0xff] }
  0xcb   : > { %v242_v27 = vmul.f32 %v241_v19, %v239_v22  ;;  %v243_v29 = vmul.f32 %v241_v19, %v240_v26 }
  0xcc   : > { %v237_v28 = vadd.f32 %v235_v25, %v227_v24 }
  0xcd   : > { %v244_v30 = vadd.f32 %v242_v27, %v236_v23 }
  0xce   : > { %v245_v31 = vadd.f32 %v243_v29, %v237_v28 }
  0xcf   : > { %v367_v32 = vmul.f32 -0.00390625, %v244_v30 }
  0xd0   : > { %v368_v33 = vmul.f32 -0.00390625, %v245_v31 }
  0xd1   : > { %v250_v34 = vmul.f32 1.442695, %v367_v32 }
  0xd2   : > { %v252_v35 = vmul.f32 1.442695, %v368_v33 }
  0xd3   : > { %442 = vpow2.f32 %v250_v34 }
  0xd4   : > { %444 = vpow2.f32 %v252_v35 }
  0xe0   : > { %v443_v36 = vpop.eup %442 }
  0xe1   : > { %v254_v37 = vadd.f32 1.0, %v443_v36  ;;  %v445_v38 = vpop.eup %444 }
  0xe2   : > { %v255_v39 = vadd.f32 1.0, %v445_v38 }
  0xe3   : > { %446 = vrcp.f32 %v254_v37 }
  0xe4   : > { %448 = vrcp.f32 %v255_v39 }
  0xf0   : > { %v447_v40 = vpop.eup %446 }
  0xf1   : > { %260 = vst.msk [vmem:[%s192_s30] sm:$0xff] %vm197_vm0, %v447_v40  ;;  %v449_v41 = vpop.eup %448 }
  0xf2   : > { %261 = vst.msk [vmem:[%s192_s30 + $0x8] sm:$0xff] %vm197_vm0, %v449_v41 }
  0xf3 PF: > { %s16_s14 = sadd.s32 1, %s543_s14   ;;  %s691_s9 = smov %s527_s10 }
  0xf4   : > { %p13_p6 = scmp.ge.s32.totalorder %s16_s14, 4   ;;  %s692_s10 = smov %s531_s11 }
  0xf5   : > { %s693_s11 = smov %s638_s6  ;;  %s694_s12 = smov %s539_s13 }
  0xf6   : > { %s695_s13 = smov %s697_s21  ;;  %15 = sbr.rel (!%p13_p6) target bundleno = 5 (0x5), region = 81 }
  0xfb   :  { %283 = vsyncpa [#allocation4], 1 }
  0xfc   :  { %285 = vsyncpa [#allocation4 + $0x1], 1 }
  0xfd   :  { %286 = vsyncpa [#allocation5], 1 }
  0xfe   :  { %288 = vsyncpa [#allocation5 + $0x1], 1 }

</bundles_post_ra>
